<compile_context>
chip_gen: v7x
topology: tpu7x:2x2x1
jax: 0.10.0
libtpu: 0.0.40
codegen_flags: <defaults>
</compile_context>

<pallas_src>
import jax
import jax.numpy as jnp
from jax.experimental import pallas as pl
from jax.experimental.pallas import tpu as pltpu


def _round_up(n, m):
    return ((n + m - 1) // m) * m


def _dense_vpu(w_ref, b_ref, x, apply_relu):
    """y = W @ x + b on the VPU, unrolled over the tiny contraction dim.

    w_ref: (out_f, in_f) Ref (PyTorch layout), b_ref: (out_f, 1) Ref,
    x: Ref or array of shape (in_f, TILE_B)  (batch in lanes).
    Returns (out_f, TILE_B) f32.
    """
    out_f, in_f = w_ref.shape
    n = x.shape[-1]
    w = w_ref[...]                                        # tiny, lives in vregs
    acc = jnp.broadcast_to(b_ref[...], (out_f, n))        # start from bias
    for i in range(in_f):                                 # static unroll, <= 16
        # (out_f, 1) lane-broadcast  *  (1, n) sublane-broadcast  -> (out_f, n)
        acc = acc + w[:, i:i + 1] * x[i:i + 1, :]
    return jnp.maximum(acc, 0.0) if apply_relu else acc


def _encoder_kernel(xt_ref, w1_ref, b1_ref, w2_ref, b2_ref, w3_ref, b3_ref,
                    o_ref):
    # Layer 1: Linear(input_dim, 8) + ReLU        -> (8, TILE_B)
    h1 = _dense_vpu(w1_ref, b1_ref, xt_ref, apply_relu=True)
    # Layer 2: Linear(8, 4) + ReLU                -> (4, TILE_B)
    h2 = _dense_vpu(w2_ref, b2_ref, h1, apply_relu=True)
    # Layer 3: Linear(4, encoding_dim), no act.   -> (enc_dim, TILE_B)
    h3 = _dense_vpu(w3_ref, b3_ref, h2, apply_relu=False)
    o_ref[...] = h3.astype(o_ref.dtype)


def autoencoder_forward(x, params, *, tile_b=1024):
    """Encoder half of the Autoencoder (== PyTorch forward).

    x: (batch, input_dim) f32.
    params: PyTorch-layout weights: w (out_f, in_f), b (out_f,).
    """
    w1, b1, w2, b2, w3, b3 = params
    batch, input_dim = x.shape
    enc_dim = w3.shape[0]

    # Lane-dense tile: multiple of 128, capped by the requested tile size.
    tile_b = _round_up(tile_b, 128)
    tb = min(tile_b, _round_up(batch, 128))
    padded = _round_up(batch, tb)
    num_tiles = padded // tb

    # Batch-in-lanes layout: (input_dim, padded_batch); zero-pad extra rows.
    xt = jnp.pad(x.T, ((0, 0), (0, padded - batch)))

    # Biases as (out_f, 1) columns so they broadcast along lanes in-kernel.
    b1c = b1.reshape(-1, 1)
    b2c = b2.reshape(-1, 1)
    b3c = b3.reshape(-1, 1)

    # Weights/biases: full-array blocks, same block every grid step -> resident.
    resident = lambda a: pl.BlockSpec(a.shape, lambda i: (0,) * a.ndim)

    out_t = pl.pallas_call(
        _encoder_kernel,
        out_shape=jax.ShapeDtypeStruct((enc_dim, padded), jnp.float32),
        grid=(num_tiles,),
        in_specs=[
            pl.BlockSpec((input_dim, tb), lambda i: (0, i)),   # x^T tile
            resident(w1), resident(b1c),
            resident(w2), resident(b2c),
            resident(w3), resident(b3c),
        ],
        out_specs=pl.BlockSpec((enc_dim, tb), lambda i: (0, i)),
        compiler_params=pltpu.CompilerParams(
            dimension_semantics=("parallel",),        # megacore on v7x
            vmem_limit_bytes=32 * 1024 * 1024,        # safe on v5e/v6e/v7x
        ),
    )(xt, w1, b1c, w2, b2c, w3, b3c)

    # Un-transpose and drop the batch padding (layout plumbing in the wrapper).
    return out_t[:, :batch].T


def init_params(key, input_dim, encoding_dim):
    """Deterministic synthetic parameters, PyTorch layout: W (out, in), b (out,)."""
    ks = jax.random.split(key, 6)
    w1 = jax.random.normal(ks[0], (8, input_dim), jnp.float32) * 0.1
    b1 = jax.random.normal(ks[1], (8,), jnp.float32) * 0.1
    w2 = jax.random.normal(ks[2], (4, 8), jnp.float32) * 0.1
    b2 = jax.random.normal(ks[3], (4,), jnp.float32) * 0.1
    w3 = jax.random.normal(ks[4], (encoding_dim, 4), jnp.float32) * 0.1
    b3 = jax.random.normal(ks[5], (encoding_dim,), jnp.float32) * 0.1
    return (w1, b1, w2, b2, w3, b3)


def _reference(x, params):
    """Plain-JAX reference (PyTorch semantics: y = x @ W.T + b)."""
    w1, b1, w2, b2, w3, b3 = params
    h = jnp.maximum(x @ w1.T + b1, 0.0)
    h = jnp.maximum(h @ w2.T + b2, 0.0)
    return h @ w3.T + b3


if __name__ == "__main__":
    batch, input_dim, encoding_dim = 2, 16, 4

    key = jax.random.PRNGKey(0)
    k_x, k_p, k_x2 = jax.random.split(key, 3)
    x = jax.random.normal(k_x, (batch, input_dim), jnp.float32)
    params = init_params(k_p, input_dim, encoding_dim)

    out = jax.block_until_ready(autoencoder_forward(x, params))
    ref = _reference(x, params)
    assert out.shape == (batch, encoding_dim)
    assert jnp.allclose(out, ref, atol=1e-5, rtol=1e-5)

    # Also exercise the multi-tile (grid > 1) path with a non-multiple batch.
    x_big = jax.random.normal(k_x2, (300, input_dim), jnp.float32)
    out_big = jax.block_until_ready(
        autoencoder_forward(x_big, params, tile_b=128))
    assert out_big.shape == (300, encoding_dim)
    assert jnp.allclose(out_big, _reference(x_big, params), atol=1e-5, rtol=1e-5)

    print("KERNEL_OK")
</pallas_src>

<mosaic_0001>
module attributes {stable_mosaic.version = 11 : i64} {
  func.func @_encoder_kernel(%arg0: i32, %arg1: memref<16x128xf32, #tpu.memory_space<vmem>>, %arg2: memref<8x16xf32, #tpu.memory_space<vmem>>, %arg3: memref<8x1xf32, #tpu.memory_space<vmem>>, %arg4: memref<4x8xf32, #tpu.memory_space<vmem>>, %arg5: memref<4x1xf32, #tpu.memory_space<vmem>>, %arg6: memref<4x4xf32, #tpu.memory_space<vmem>>, %arg7: memref<4x1xf32, #tpu.memory_space<vmem>>, %arg8: memref<4x128xf32, #tpu.memory_space<vmem>>) attributes {dimension_semantics = [#tpu.dimension_semantics<parallel>], iteration_bounds = array<i64: 1>, scalar_prefetch = 0 : i64, scratch_operands = 0 : i64, tpu.core_type = #tpu.core_type<tc>, window_params = [{transform_indices = @transform_0, window_bounds = array<i64: 16, 128>}, {pipeline_mode = #tpu.pipeline_mode<synchronous>, transform_indices = @transform_1, window_bounds = array<i64: 8, 16>}, {pipeline_mode = #tpu.pipeline_mode<synchronous>, transform_indices = @transform_2, window_bounds = array<i64: 8, 1>}, {pipeline_mode = #tpu.pipeline_mode<synchronous>, transform_indices = @transform_3, window_bounds = array<i64: 4, 8>}, {pipeline_mode = #tpu.pipeline_mode<synchronous>, transform_indices = @transform_4, window_bounds = array<i64: 4, 1>}, {pipeline_mode = #tpu.pipeline_mode<synchronous>, transform_indices = @transform_5, window_bounds = array<i64: 4, 4>}, {pipeline_mode = #tpu.pipeline_mode<synchronous>, transform_indices = @transform_6, window_bounds = array<i64: 4, 1>}, {transform_indices = @transform_7, window_bounds = array<i64: 4, 128>}]} {
    %c0 = arith.constant 0 : index
    %c0_0 = arith.constant 0 : index
    %0 = vector.load %arg2[%c0, %c0_0] : memref<8x16xf32, #tpu.memory_space<vmem>>, vector<8x16xf32>
    %c0_1 = arith.constant 0 : index
    %c0_2 = arith.constant 0 : index
    %1 = vector.load %arg3[%c0_1, %c0_2] : memref<8x1xf32, #tpu.memory_space<vmem>>, vector<8x1xf32>
    %2 = vector.shape_cast %1 : vector<8x1xf32> to vector<8x1xf32>
    %3 = vector.broadcast %2 : vector<8x1xf32> to vector<8x128xf32>
    %4 = vector.extract_strided_slice %0 {offsets = [0, 0], sizes = [8, 1], strides = [1, 1]} : vector<8x16xf32> to vector<8x1xf32>
    %c0_3 = arith.constant 0 : index
    %c0_4 = arith.constant 0 : index
    %5 = vector.load %arg1[%c0_3, %c0_4] : memref<16x128xf32, #tpu.memory_space<vmem>>, vector<1x128xf32>
    %6 = vector.broadcast %4 : vector<8x1xf32> to vector<8x128xf32>
    %7 = vector.broadcast %5 : vector<1x128xf32> to vector<8x128xf32>
    %8 = arith.mulf %6, %7 : vector<8x128xf32>
    %9 = arith.addf %3, %8 : vector<8x128xf32>
    %10 = vector.extract_strided_slice %0 {offsets = [0, 1], sizes = [8, 1], strides = [1, 1]} : vector<8x16xf32> to vector<8x1xf32>
    %c1 = arith.constant 1 : index
    %c0_5 = arith.constant 0 : index
    %11 = vector.load %arg1[%c1, %c0_5] : memref<16x128xf32, #tpu.memory_space<vmem>>, vector<1x128xf32>
    %12 = vector.broadcast %10 : vector<8x1xf32> to vector<8x128xf32>
    %13 = vector.broadcast %11 : vector<1x128xf32> to vector<8x128xf32>
    %14 = arith.mulf %12, %13 : vector<8x128xf32>
    %15 = arith.addf %9, %14 : vector<8x128xf32>
    %16 = vector.extract_strided_slice %0 {offsets = [0, 2], sizes = [8, 1], strides = [1, 1]} : vector<8x16xf32> to vector<8x1xf32>
    %c2 = arith.constant 2 : index
    %c0_6 = arith.constant 0 : index
    %17 = vector.load %arg1[%c2, %c0_6] : memref<16x128xf32, #tpu.memory_space<vmem>>, vector<1x128xf32>
    %18 = vector.broadcast %16 : vector<8x1xf32> to vector<8x128xf32>
    %19 = vector.broadcast %17 : vector<1x128xf32> to vector<8x128xf32>
    %20 = arith.mulf %18, %19 : vector<8x128xf32>
    %21 = arith.addf %15, %20 : vector<8x128xf32>
    %22 = vector.extract_strided_slice %0 {offsets = [0, 3], sizes = [8, 1], strides = [1, 1]} : vector<8x16xf32> to vector<8x1xf32>
    %c3 = arith.constant 3 : index
    %c0_7 = arith.constant 0 : index
    %23 = vector.load %arg1[%c3, %c0_7] : memref<16x128xf32, #tpu.memory_space<vmem>>, vector<1x128xf32>
    %24 = vector.broadcast %22 : vector<8x1xf32> to vector<8x128xf32>
    %25 = vector.broadcast %23 : vector<1x128xf32> to vector<8x128xf32>
    %26 = arith.mulf %24, %25 : vector<8x128xf32>
    %27 = arith.addf %21, %26 : vector<8x128xf32>
    %28 = vector.extract_strided_slice %0 {offsets = [0, 4], sizes = [8, 1], strides = [1, 1]} : vector<8x16xf32> to vector<8x1xf32>
    %c4 = arith.constant 4 : index
    %c0_8 = arith.constant 0 : index
    %29 = vector.load %arg1[%c4, %c0_8] : memref<16x128xf32, #tpu.memory_space<vmem>>, vector<1x128xf32>
    %30 = vector.broadcast %28 : vector<8x1xf32> to vector<8x128xf32>
    %31 = vector.broadcast %29 : vector<1x128xf32> to vector<8x128xf32>
    %32 = arith.mulf %30, %31 : vector<8x128xf32>
    %33 = arith.addf %27, %32 : vector<8x128xf32>
    %34 = vector.extract_strided_slice %0 {offsets = [0, 5], sizes = [8, 1], strides = [1, 1]} : vector<8x16xf32> to vector<8x1xf32>
    %c5 = arith.constant 5 : index
    %c0_9 = arith.constant 0 : index
    %35 = vector.load %arg1[%c5, %c0_9] : memref<16x128xf32, #tpu.memory_space<vmem>>, vector<1x128xf32>
    %36 = vector.broadcast %34 : vector<8x1xf32> to vector<8x128xf32>
    %37 = vector.broadcast %35 : vector<1x128xf32> to vector<8x128xf32>
    %38 = arith.mulf %36, %37 : vector<8x128xf32>
    %39 = arith.addf %33, %38 : vector<8x128xf32>
    %40 = vector.extract_strided_slice %0 {offsets = [0, 6], sizes = [8, 1], strides = [1, 1]} : vector<8x16xf32> to vector<8x1xf32>
    %c6 = arith.constant 6 : index
    %c0_10 = arith.constant 0 : index
    %41 = vector.load %arg1[%c6, %c0_10] : memref<16x128xf32, #tpu.memory_space<vmem>>, vector<1x128xf32>
    %42 = vector.broadcast %40 : vector<8x1xf32> to vector<8x128xf32>
    %43 = vector.broadcast %41 : vector<1x128xf32> to vector<8x128xf32>
    %44 = arith.mulf %42, %43 : vector<8x128xf32>
    %45 = arith.addf %39, %44 : vector<8x128xf32>
    %46 = vector.extract_strided_slice %0 {offsets = [0, 7], sizes = [8, 1], strides = [1, 1]} : vector<8x16xf32> to vector<8x1xf32>
    %c7 = arith.constant 7 : index
    %c0_11 = arith.constant 0 : index
    %47 = vector.load %arg1[%c7, %c0_11] : memref<16x128xf32, #tpu.memory_space<vmem>>, vector<1x128xf32>
    %48 = vector.broadcast %46 : vector<8x1xf32> to vector<8x128xf32>
    %49 = vector.broadcast %47 : vector<1x128xf32> to vector<8x128xf32>
    %50 = arith.mulf %48, %49 : vector<8x128xf32>
    %51 = arith.addf %45, %50 : vector<8x128xf32>
    %52 = vector.extract_strided_slice %0 {offsets = [0, 8], sizes = [8, 1], strides = [1, 1]} : vector<8x16xf32> to vector<8x1xf32>
    %c8 = arith.constant 8 : index
    %c0_12 = arith.constant 0 : index
    %53 = vector.load %arg1[%c8, %c0_12] : memref<16x128xf32, #tpu.memory_space<vmem>>, vector<1x128xf32>
    %54 = vector.broadcast %52 : vector<8x1xf32> to vector<8x128xf32>
    %55 = vector.broadcast %53 : vector<1x128xf32> to vector<8x128xf32>
    %56 = arith.mulf %54, %55 : vector<8x128xf32>
    %57 = arith.addf %51, %56 : vector<8x128xf32>
    %58 = vector.extract_strided_slice %0 {offsets = [0, 9], sizes = [8, 1], strides = [1, 1]} : vector<8x16xf32> to vector<8x1xf32>
    %c9 = arith.constant 9 : index
    %c0_13 = arith.constant 0 : index
    %59 = vector.load %arg1[%c9, %c0_13] : memref<16x128xf32, #tpu.memory_space<vmem>>, vector<1x128xf32>
    %60 = vector.broadcast %58 : vector<8x1xf32> to vector<8x128xf32>
    %61 = vector.broadcast %59 : vector<1x128xf32> to vector<8x128xf32>
    %62 = arith.mulf %60, %61 : vector<8x128xf32>
    %63 = arith.addf %57, %62 : vector<8x128xf32>
    %64 = vector.extract_strided_slice %0 {offsets = [0, 10], sizes = [8, 1], strides = [1, 1]} : vector<8x16xf32> to vector<8x1xf32>
    %c10 = arith.constant 10 : index
    %c0_14 = arith.constant 0 : index
    %65 = vector.load %arg1[%c10, %c0_14] : memref<16x128xf32, #tpu.memory_space<vmem>>, vector<1x128xf32>
    %66 = vector.broadcast %64 : vector<8x1xf32> to vector<8x128xf32>
    %67 = vector.broadcast %65 : vector<1x128xf32> to vector<8x128xf32>
    %68 = arith.mulf %66, %67 : vector<8x128xf32>
    %69 = arith.addf %63, %68 : vector<8x128xf32>
    %70 = vector.extract_strided_slice %0 {offsets = [0, 11], sizes = [8, 1], strides = [1, 1]} : vector<8x16xf32> to vector<8x1xf32>
    %c11 = arith.constant 11 : index
    %c0_15 = arith.constant 0 : index
    %71 = vector.load %arg1[%c11, %c0_15] : memref<16x128xf32, #tpu.memory_space<vmem>>, vector<1x128xf32>
    %72 = vector.broadcast %70 : vector<8x1xf32> to vector<8x128xf32>
    %73 = vector.broadcast %71 : vector<1x128xf32> to vector<8x128xf32>
    %74 = arith.mulf %72, %73 : vector<8x128xf32>
    %75 = arith.addf %69, %74 : vector<8x128xf32>
    %76 = vector.extract_strided_slice %0 {offsets = [0, 12], sizes = [8, 1], strides = [1, 1]} : vector<8x16xf32> to vector<8x1xf32>
    %c12 = arith.constant 12 : index
    %c0_16 = arith.constant 0 : index
    %77 = vector.load %arg1[%c12, %c0_16] : memref<16x128xf32, #tpu.memory_space<vmem>>, vector<1x128xf32>
    %78 = vector.broadcast %76 : vector<8x1xf32> to vector<8x128xf32>
    %79 = vector.broadcast %77 : vector<1x128xf32> to vector<8x128xf32>
    %80 = arith.mulf %78, %79 : vector<8x128xf32>
    %81 = arith.addf %75, %80 : vector<8x128xf32>
    %82 = vector.extract_strided_slice %0 {offsets = [0, 13], sizes = [8, 1], strides = [1, 1]} : vector<8x16xf32> to vector<8x1xf32>
    %c13 = arith.constant 13 : index
    %c0_17 = arith.constant 0 : index
    %83 = vector.load %arg1[%c13, %c0_17] : memref<16x128xf32, #tpu.memory_space<vmem>>, vector<1x128xf32>
    %84 = vector.broadcast %82 : vector<8x1xf32> to vector<8x128xf32>
    %85 = vector.broadcast %83 : vector<1x128xf32> to vector<8x128xf32>
    %86 = arith.mulf %84, %85 : vector<8x128xf32>
    %87 = arith.addf %81, %86 : vector<8x128xf32>
    %88 = vector.extract_strided_slice %0 {offsets = [0, 14], sizes = [8, 1], strides = [1, 1]} : vector<8x16xf32> to vector<8x1xf32>
    %c14 = arith.constant 14 : index
    %c0_18 = arith.constant 0 : index
    %89 = vector.load %arg1[%c14, %c0_18] : memref<16x128xf32, #tpu.memory_space<vmem>>, vector<1x128xf32>
    %90 = vector.broadcast %88 : vector<8x1xf32> to vector<8x128xf32>
    %91 = vector.broadcast %89 : vector<1x128xf32> to vector<8x128xf32>
    %92 = arith.mulf %90, %91 : vector<8x128xf32>
    %93 = arith.addf %87, %92 : vector<8x128xf32>
    %94 = vector.extract_strided_slice %0 {offsets = [0, 15], sizes = [8, 1], strides = [1, 1]} : vector<8x16xf32> to vector<8x1xf32>
    %c15 = arith.constant 15 : index
    %c0_19 = arith.constant 0 : index
    %95 = vector.load %arg1[%c15, %c0_19] : memref<16x128xf32, #tpu.memory_space<vmem>>, vector<1x128xf32>
    %96 = vector.broadcast %94 : vector<8x1xf32> to vector<8x128xf32>
    %97 = vector.broadcast %95 : vector<1x128xf32> to vector<8x128xf32>
    %98 = arith.mulf %96, %97 : vector<8x128xf32>
    %99 = arith.addf %93, %98 : vector<8x128xf32>
    %cst = arith.constant 0.000000e+00 : f32
    %100 = vector.broadcast %cst : f32 to vector<8x128xf32>
    %101 = arith.maximumf %99, %100 : vector<8x128xf32>
    %c0_20 = arith.constant 0 : index
    %c0_21 = arith.constant 0 : index
    %102 = vector.load %arg4[%c0_20, %c0_21] : memref<4x8xf32, #tpu.memory_space<vmem>>, vector<4x8xf32>
    %c0_22 = arith.constant 0 : index
    %c0_23 = arith.constant 0 : index
    %103 = vector.load %arg5[%c0_22, %c0_23] : memref<4x1xf32, #tpu.memory_space<vmem>>, vector<4x1xf32>
    %104 = vector.shape_cast %103 : vector<4x1xf32> to vector<4x1xf32>
    %105 = vector.broadcast %104 : vector<4x1xf32> to vector<4x128xf32>
    %106 = vector.extract_strided_slice %102 {offsets = [0, 0], sizes = [4, 1], strides = [1, 1]} : vector<4x8xf32> to vector<4x1xf32>
    %107 = vector.extract_strided_slice %101 {offsets = [0, 0], sizes = [1, 128], strides = [1, 1]} : vector<8x128xf32> to vector<1x128xf32>
    %108 = vector.broadcast %106 : vector<4x1xf32> to vector<4x128xf32>
    %109 = vector.broadcast %107 : vector<1x128xf32> to vector<4x128xf32>
    %110 = arith.mulf %108, %109 : vector<4x128xf32>
    %111 = arith.addf %105, %110 : vector<4x128xf32>
    %112 = vector.extract_strided_slice %102 {offsets = [0, 1], sizes = [4, 1], strides = [1, 1]} : vector<4x8xf32> to vector<4x1xf32>
    %113 = vector.extract_strided_slice %101 {offsets = [1, 0], sizes = [1, 128], strides = [1, 1]} : vector<8x128xf32> to vector<1x128xf32>
    %114 = vector.broadcast %112 : vector<4x1xf32> to vector<4x128xf32>
    %115 = vector.broadcast %113 : vector<1x128xf32> to vector<4x128xf32>
    %116 = arith.mulf %114, %115 : vector<4x128xf32>
    %117 = arith.addf %111, %116 : vector<4x128xf32>
    %118 = vector.extract_strided_slice %102 {offsets = [0, 2], sizes = [4, 1], strides = [1, 1]} : vector<4x8xf32> to vector<4x1xf32>
    %119 = vector.extract_strided_slice %101 {offsets = [2, 0], sizes = [1, 128], strides = [1, 1]} : vector<8x128xf32> to vector<1x128xf32>
    %120 = vector.broadcast %118 : vector<4x1xf32> to vector<4x128xf32>
    %121 = vector.broadcast %119 : vector<1x128xf32> to vector<4x128xf32>
    %122 = arith.mulf %120, %121 : vector<4x128xf32>
    %123 = arith.addf %117, %122 : vector<4x128xf32>
    %124 = vector.extract_strided_slice %102 {offsets = [0, 3], sizes = [4, 1], strides = [1, 1]} : vector<4x8xf32> to vector<4x1xf32>
    %125 = vector.extract_strided_slice %101 {offsets = [3, 0], sizes = [1, 128], strides = [1, 1]} : vector<8x128xf32> to vector<1x128xf32>
    %126 = vector.broadcast %124 : vector<4x1xf32> to vector<4x128xf32>
    %127 = vector.broadcast %125 : vector<1x128xf32> to vector<4x128xf32>
    %128 = arith.mulf %126, %127 : vector<4x128xf32>
    %129 = arith.addf %123, %128 : vector<4x128xf32>
    %130 = vector.extract_strided_slice %102 {offsets = [0, 4], sizes = [4, 1], strides = [1, 1]} : vector<4x8xf32> to vector<4x1xf32>
    %131 = vector.extract_strided_slice %101 {offsets = [4, 0], sizes = [1, 128], strides = [1, 1]} : vector<8x128xf32> to vector<1x128xf32>
    %132 = vector.broadcast %130 : vector<4x1xf32> to vector<4x128xf32>
    %133 = vector.broadcast %131 : vector<1x128xf32> to vector<4x128xf32>
    %134 = arith.mulf %132, %133 : vector<4x128xf32>
    %135 = arith.addf %129, %134 : vector<4x128xf32>
    %136 = vector.extract_strided_slice %102 {offsets = [0, 5], sizes = [4, 1], strides = [1, 1]} : vector<4x8xf32> to vector<4x1xf32>
    %137 = vector.extract_strided_slice %101 {offsets = [5, 0], sizes = [1, 128], strides = [1, 1]} : vector<8x128xf32> to vector<1x128xf32>
    %138 = vector.broadcast %136 : vector<4x1xf32> to vector<4x128xf32>
    %139 = vector.broadcast %137 : vector<1x128xf32> to vector<4x128xf32>
    %140 = arith.mulf %138, %139 : vector<4x128xf32>
    %141 = arith.addf %135, %140 : vector<4x128xf32>
    %142 = vector.extract_strided_slice %102 {offsets = [0, 6], sizes = [4, 1], strides = [1, 1]} : vector<4x8xf32> to vector<4x1xf32>
    %143 = vector.extract_strided_slice %101 {offsets = [6, 0], sizes = [1, 128], strides = [1, 1]} : vector<8x128xf32> to vector<1x128xf32>
    %144 = vector.broadcast %142 : vector<4x1xf32> to vector<4x128xf32>
    %145 = vector.broadcast %143 : vector<1x128xf32> to vector<4x128xf32>
    %146 = arith.mulf %144, %145 : vector<4x128xf32>
    %147 = arith.addf %141, %146 : vector<4x128xf32>
    %148 = vector.extract_strided_slice %102 {offsets = [0, 7], sizes = [4, 1], strides = [1, 1]} : vector<4x8xf32> to vector<4x1xf32>
    %149 = vector.extract_strided_slice %101 {offsets = [7, 0], sizes = [1, 128], strides = [1, 1]} : vector<8x128xf32> to vector<1x128xf32>
    %150 = vector.broadcast %148 : vector<4x1xf32> to vector<4x128xf32>
    %151 = vector.broadcast %149 : vector<1x128xf32> to vector<4x128xf32>
    %152 = arith.mulf %150, %151 : vector<4x128xf32>
    %153 = arith.addf %147, %152 : vector<4x128xf32>
    %cst_24 = arith.constant 0.000000e+00 : f32
    %154 = vector.broadcast %cst_24 : f32 to vector<4x128xf32>
    %155 = arith.maximumf %153, %154 : vector<4x128xf32>
    %c0_25 = arith.constant 0 : index
    %c0_26 = arith.constant 0 : index
    %156 = vector.load %arg6[%c0_25, %c0_26] : memref<4x4xf32, #tpu.memory_space<vmem>>, vector<4x4xf32>
    %c0_27 = arith.constant 0 : index
    %c0_28 = arith.constant 0 : index
    %157 = vector.load %arg7[%c0_27, %c0_28] : memref<4x1xf32, #tpu.memory_space<vmem>>, vector<4x1xf32>
    %158 = vector.shape_cast %157 : vector<4x1xf32> to vector<4x1xf32>
    %159 = vector.broadcast %158 : vector<4x1xf32> to vector<4x128xf32>
    %160 = vector.extract_strided_slice %156 {offsets = [0, 0], sizes = [4, 1], strides = [1, 1]} : vector<4x4xf32> to vector<4x1xf32>
    %161 = vector.extract_strided_slice %155 {offsets = [0, 0], sizes = [1, 128], strides = [1, 1]} : vector<4x128xf32> to vector<1x128xf32>
    %162 = vector.broadcast %160 : vector<4x1xf32> to vector<4x128xf32>
    %163 = vector.broadcast %161 : vector<1x128xf32> to vector<4x128xf32>
    %164 = arith.mulf %162, %163 : vector<4x128xf32>
    %165 = arith.addf %159, %164 : vector<4x128xf32>
    %166 = vector.extract_strided_slice %156 {offsets = [0, 1], sizes = [4, 1], strides = [1, 1]} : vector<4x4xf32> to vector<4x1xf32>
    %167 = vector.extract_strided_slice %155 {offsets = [1, 0], sizes = [1, 128], strides = [1, 1]} : vector<4x128xf32> to vector<1x128xf32>
    %168 = vector.broadcast %166 : vector<4x1xf32> to vector<4x128xf32>
    %169 = vector.broadcast %167 : vector<1x128xf32> to vector<4x128xf32>
    %170 = arith.mulf %168, %169 : vector<4x128xf32>
    %171 = arith.addf %165, %170 : vector<4x128xf32>
    %172 = vector.extract_strided_slice %156 {offsets = [0, 2], sizes = [4, 1], strides = [1, 1]} : vector<4x4xf32> to vector<4x1xf32>
    %173 = vector.extract_strided_slice %155 {offsets = [2, 0], sizes = [1, 128], strides = [1, 1]} : vector<4x128xf32> to vector<1x128xf32>
    %174 = vector.broadcast %172 : vector<4x1xf32> to vector<4x128xf32>
    %175 = vector.broadcast %173 : vector<1x128xf32> to vector<4x128xf32>
    %176 = arith.mulf %174, %175 : vector<4x128xf32>
    %177 = arith.addf %171, %176 : vector<4x128xf32>
    %178 = vector.extract_strided_slice %156 {offsets = [0, 3], sizes = [4, 1], strides = [1, 1]} : vector<4x4xf32> to vector<4x1xf32>
    %179 = vector.extract_strided_slice %155 {offsets = [3, 0], sizes = [1, 128], strides = [1, 1]} : vector<4x128xf32> to vector<1x128xf32>
    %180 = vector.broadcast %178 : vector<4x1xf32> to vector<4x128xf32>
    %181 = vector.broadcast %179 : vector<1x128xf32> to vector<4x128xf32>
    %182 = arith.mulf %180, %181 : vector<4x128xf32>
    %183 = arith.addf %177, %182 : vector<4x128xf32>
    %c0_29 = arith.constant 0 : index
    %c0_30 = arith.constant 0 : index
    %184 = vector.load %arg8[%c0_29, %c0_30] : memref<4x128xf32, #tpu.memory_space<vmem>>, vector<4x128xf32>
    tpu.vector_store %arg8[%c0_29, %c0_30], %183 {strides = array<i32>} : memref<4x128xf32, #tpu.memory_space<vmem>>, vector<4x128xf32>,
    return
  }
  func.func @transform_0(%arg0: i32) -> (i32, i32) {
    %c0_i32 = arith.constant 0 : i32
    %c0_i32_0 = arith.constant 0 : i32
    return %c0_i32, %arg0 : i32, i32
  }
  func.func @transform_1(%arg0: i32) -> (i32, i32) {
    %c0_i32 = arith.constant 0 : i32
    %c0_i32_0 = arith.constant 0 : i32
    %c0_i32_1 = arith.constant 0 : i32
    return %c0_i32, %c0_i32_0 : i32, i32
  }
  func.func @transform_2(%arg0: i32) -> (i32, i32) {
    %c0_i32 = arith.constant 0 : i32
    %c0_i32_0 = arith.constant 0 : i32
    %c0_i32_1 = arith.constant 0 : i32
    return %c0_i32, %c0_i32_0 : i32, i32
  }
  func.func @transform_3(%arg0: i32) -> (i32, i32) {
    %c0_i32 = arith.constant 0 : i32
    %c0_i32_0 = arith.constant 0 : i32
    %c0_i32_1 = arith.constant 0 : i32
    return %c0_i32, %c0_i32_0 : i32, i32
  }
  func.func @transform_4(%arg0: i32) -> (i32, i32) {
    %c0_i32 = arith.constant 0 : i32
    %c0_i32_0 = arith.constant 0 : i32
    %c0_i32_1 = arith.constant 0 : i32
    return %c0_i32, %c0_i32_0 : i32, i32
  }
  func.func @transform_5(%arg0: i32) -> (i32, i32) {
    %c0_i32 = arith.constant 0 : i32
    %c0_i32_0 = arith.constant 0 : i32
    %c0_i32_1 = arith.constant 0 : i32
    return %c0_i32, %c0_i32_0 : i32, i32
  }
  func.func @transform_6(%arg0: i32) -> (i32, i32) {
    %c0_i32 = arith.constant 0 : i32
    %c0_i32_0 = arith.constant 0 : i32
    %c0_i32_1 = arith.constant 0 : i32
    return %c0_i32, %c0_i32_0 : i32, i32
  }
  func.func @transform_7(%arg0: i32) -> (i32, i32) {
    %c0_i32 = arith.constant 0 : i32
    %c0_i32_0 = arith.constant 0 : i32
    return %c0_i32, %arg0 : i32, i32
  }
}

</mosaic_0001>

<bundles_post_ra>
// kernel: tpu_custom_call.1
= control target key start
LH: loop header
LB: loop body
LE: loop exit
PB: predicated region body
PF: predicated region fallthrough
CT: control target
= control target key end

     0   :  { %12 = vsyncpa [#allocation3], 0  ;;  %s643_s0 = inlined_call_operand.vmem [shape: f32[16,128], index: 0, kind: input, shape index: {}]   ;;  %s644_s1 = inlined_call_operand.hbm [shape: f32[8,16], index: 1, kind: input, shape index: {}]   ;;  %s645_s2 = inlined_call_operand.vmem [shape: f32[8,1], index: 2, kind: input, shape index: {}]   ;;  %s646_s3 = inlined_call_operand.vmem [shape: f32[4,8], index: 3, kind: input, shape index: {}]   ;;  %s647_s4 = inlined_call_operand.vmem [shape: f32[4,1], index: 4, kind: input, shape index: {}]   ;;  %s648_s5 = inlined_call_operand.vmem [shape: f32[4,4], index: 5, kind: input, shape index: {}]   ;;  %s649_s6 = inlined_call_operand.vmem [shape: f32[4,1], index: 6, kind: input, shape index: {}]   ;;  %s650_s7 = inlined_call_operand.hbm [shape: f32[4,128], index: 7, kind: output, shape index: {}]  }
   0x1   :  { %13 = vsyncpa [#allocation4], 0  ;;  %s488_s24 = smov [#allocation2]   ;;  %s440_s28 = scalar_lea.hbm %s644_s1, 128 }
   0x2   :  { %s22_s25 = sshll.u32 %s488_s24, 4  ;;  %p441_p0 = scmp.ne.s32.totalorder %s644_s1, %s440_s28  ;;  %s23_s25 = int_to_ptr.vmem [resolvable:$true] %s22_s25 }
   0x3   :  { %p444_p1 = scmp.lt.u32.totalorder %s440_s28, %s644_s1 }
   0x5   :  { %p446_p2 = pnand %p444_p1, %p441_p0 }
   0x7   :  { %449 = shalt.err (!%p446_p2)
}
   0x8   :  { %s450_s10 = scalar_lea.vmem %s23_s25, 128  ;;  %p455_p4 = scmp.lt.s32.totalorder %s23_s25, %s23_s25 }
   0x9   :  { %p451_p3 = scmp.ne.s32.totalorder %s23_s25, %s450_s10  ;;  %p456_p5 = scmp.lt.s32.totalorder %s450_s10, %s450_s10 }
   0xb   :  { %p457_p6 = por %p456_p5, %p455_p4 }
   0xd   :  { %p458_p7 = pnand %p457_p6, %p451_p3 }
   0xf   :  { %461 = shalt.err (!%p458_p7)
}
  0x10   :  { %25 = dma.hbm_to_vmem [thread:$0]  %s644_s1, 128, %s23_s25, [#allocation3]  }
  0x11   :  { %484 = dma.done.wait [#allocation3], 128  }
  0x12   :  { %485 = vsyncadd [#allocation3], 4294967168  ;;  %v489_v0 = vmov 1   ;;  %v490_v1 = vmov 0   ;;  %v39_v2 = vld [vmem:[#allocation2] sm:$0xff]  ;;  %v491_v4 = vmov 2  }
  0x13   :  { %412 = vset.pattern.permute.xlu1 %v489_v0  ;;  %411 = vset.pattern.permute.xlu0 %v490_v1  ;;  %v40_v3 = vld [vmem:[%s645_s2] sm:$0xff]  ;;  %v492_v5 = vmov 3   ;;  %v493_v6 = vmov 4   ;;  %v494_v7 = vmov 6   ;;  %v495_v8 = vmov 5  }
  0x14   :  { %60 = vperm.xlu1 %412, %v39_v2   ;;  %49 = vperm.xlu0 %411, %v39_v2   ;;  %v496_v9 = vmov 9   ;;  %v497_v10 = vmov 7   ;;  %v498_v11 = vmov 12   ;;  %v499_v12 = vmov 8   ;;  %v224_v15 = vld [vmem:[%s646_s3] sm:$0xf] }
  0x15   :  { %v500_v13 = vmov 15   ;;  %v501_v14 = vmov 10   ;;  %v502_v16 = vmov 11   ;;  %v503_v17 = vmov 13   ;;  %v313_v19 = vld [vmem:[%s648_s5] sm:$0xf] }
  0x16   :  { %v504_v18 = vmov 14   ;;  %v225_v20 = vld [vmem:[%s647_s4] sm:$0xf]  ;;  %v381_v37 = vld [vmem:[%s643_s0 + $0x4] ss:$0 sm:$0xff] }
  0x17   :  { %v314_v21 = vld [vmem:[%s649_s6] sm:$0xf]  ;;  %v382_v42 = vld [vmem:[%s643_s0 + $0x5] ss:$0 sm:$0xff]  ;;  %v383_v44 = vld [vmem:[%s643_s0 + $0x6] ss:$0 sm:$0xff] }
  0x18   :  { %413 = vset.pattern.permute.xlu1 %v491_v4  ;;  %43 = vperm.xlu0 %411, %v40_v3   ;;  %v377_v22 = vld [vmem:[%s643_s0] ss:$0 sm:$0xff]  ;;  %v378_v26 = vld [vmem:[%s643_s0 + $0x1] ss:$0 sm:$0xff]  ;;  %v379_v27 = vld [vmem:[%s643_s0 + $0x2] ss:$0 sm:$0xff] }
  0x19   :  { %71 = vperm.xlu1 %413, %v39_v2   ;;  %v380_v34 = vld [vmem:[%s643_s0 + $0x3] ss:$0 sm:$0xff]  ;;  %v384_v50 = vld [vmem:[%s643_s0 + $0x7] ss:$0 sm:$0xff]  ;;  %v385_v54 = vld [vmem:[%s643_s0 + $0x8] ss:$0 sm:$0xff] }
  0x1a   :  { %v386_v56 = vld [vmem:[%s643_s0 + $0x9] ss:$0 sm:$0xff]  ;;  %v387_v62 = vld [vmem:[%s643_s0 + $0xa] ss:$0 sm:$0xff] }
  0x1c   :  { %414 = vset.pattern.permute.xlu0 %v492_v5 }
  0x1d   :  { %415 = vset.pattern.permute.xlu1 %v493_v6  ;;  %82 = vperm.xlu0 %414, %v39_v2  }
  0x1e   :  { %93 = vperm.xlu1 %415, %v39_v2  }
  0x21   :  { %417 = vset.pattern.permute.xlu0 %v494_v7 }
  0x22   :  { %416 = vset.pattern.permute.xlu1 %v495_v8  ;;  %115 = vperm.xlu0 %417, %v39_v2  }
  0x23   :  { %104 = vperm.xlu1 %416, %v39_v2  }
  0x26   :  { %420 = vset.pattern.permute.xlu0 %v496_v9 }
  0x27   :  { %418 = vset.pattern.permute.xlu1 %v497_v10  ;;  %148 = vperm.xlu0 %420, %v39_v2  }
  0x28   :  { %126 = vperm.xlu1 %418, %v39_v2  }
  0x2b   :  { %423 = vset.pattern.permute.xlu0 %v498_v11 }
  0x2c   :  { %419 = vset.pattern.permute.xlu1 %v499_v12  ;;  %181 = vperm.xlu0 %423, %v39_v2  }
  0x2d   :  { %137 = vperm.xlu1 %419, %v39_v2  }
  0x30   :  { %426 = vset.pattern.permute.xlu0 %v500_v13 }
  0x31   :  { %421 = vset.pattern.permute.xlu1 %v501_v14  ;;  %214 = vperm.xlu0 %426, %v39_v2   ;;  %v236_v14 = vlaneseq }
  0x32   :  { %159 = vperm.xlu1 %421, %v39_v2  }
  0x35   :  { %428 = vset.pattern.permute.xlu0 %v489_v0 }
  0x36   :  { %422 = vset.pattern.permute.xlu1 %v502_v16  ;;  %243 = vperm.xlu0 %428, %v224_v15   ;;  %v391_v16 = vld [vmem:[%s643_s0 + $0xe] ss:$0 sm:$0xff] }
  0x37   :  { %170 = vperm.xlu1 %422, %v39_v2  }
  0x3a   :  { %431 = vset.pattern.permute.xlu0 %v493_v6 }
  0x3b   :  { %424 = vset.pattern.permute.xlu1 %v503_v17  ;;  %273 = vperm.xlu0 %431, %v224_v15  }
  0x3c   :  { %192 = vperm.xlu1 %424, %v39_v2  }
  0x3f   :  { %434 = vset.pattern.permute.xlu0 %v497_v10  ;;  %v390_v10 = vld [vmem:[%s643_s0 + $0xd] ss:$0 sm:$0xff] }
  0x40   :  { %425 = vset.pattern.permute.xlu1 %v504_v18  ;;  %303 = vperm.xlu0 %434, %v224_v15  }
  0x41   :  { %203 = vperm.xlu1 %425, %v39_v2   ;;  %v388_v2 = vld [vmem:[%s643_s0 + $0xb] ss:$0 sm:$0xff] }
  0x44   :  { %436 = vset.pattern.permute.xlu0 %v489_v0 }
  0x45   :  { %427 = vset.pattern.permute.xlu1 %v490_v1  ;;  %332 = vperm.xlu0 %436, %v313_v19  }
  0x46   :  { %233 = vperm.xlu1 %427, %v224_v15  }
  0x49   :  { %439 = vset.pattern.permute.xlu0 %v492_v5 }
  0x4a   :  { %228 = vperm.xlu1 %427, %v225_v20  }
  0x4e   :  { %429 = vset.pattern.permute.xlu1 %v491_v4 }
  0x4f   :  { %253 = vperm.xlu1 %429, %v224_v15  }
  0x53   :  { %430 = vset.pattern.permute.xlu1 %v492_v5 }
  0x54   :  { %263 = vperm.xlu1 %430, %v224_v15  }
  0x58   :  { %432 = vset.pattern.permute.xlu1 %v495_v8 }
  0x59   :  { %283 = vperm.xlu1 %432, %v224_v15  }
  0x5d   :  { %433 = vset.pattern.permute.xlu1 %v494_v7 }
  0x5e   :  { %293 = vperm.xlu1 %433, %v224_v15   ;;  %v392_v15 = vld [vmem:[%s643_s0 + $0xf] ss:$0 sm:$0xff] }
  0x62   :  { %435 = vset.pattern.permute.xlu1 %v490_v1 }
  0x63   :  { %322 = vperm.xlu1 %435, %v313_v19  }
  0x67   :  { %317 = vperm.xlu1 %435, %v314_v21  }
  0x6b   :  { %437 = vset.pattern.permute.xlu1 %v491_v4  ;;  %v389_v4 = vld [vmem:[%s643_s0 + $0xc] ss:$0 sm:$0xff]  ;;  %s505_s0 = smov [#allocation5]  }
  0x6c   :  { %342 = vperm.xlu1 %437, %v313_v19   ;;  %s368_s21 = sshll.u32 %s505_s0, 4  ;;  %s369_s21 = int_to_ptr.vmem [resolvable:$true] %s368_s21 }
  0x6d   :  { %s462_s22 = scalar_lea.vmem %s369_s21, 64  ;;  %p467_p9 = scmp.lt.s32.totalorder %s369_s21, %s369_s21 }
  0x6e   :  { %p463_p8 = scmp.ne.s32.totalorder %s369_s21, %s462_s22  ;;  %p468_p10 = scmp.lt.s32.totalorder %s462_s22, %s462_s22 }
  0x70   :  { %438 = vset.pattern.permute.xlu1 %v492_v5  ;;  %p469_p11 = por %p468_p10, %p467_p9 }
  0x71   :  { %352 = vperm.xlu1 %438, %v313_v19  }
  0x72   :  { %p470_p12 = pnand %p469_p11, %p463_p8 }
  0x93   :  { %v61_v23 = vpop.permute.xlu1 %60  ;;  %v50_v24 = vpop.permute.xlu0 %49 }
  0x94   :  { %v56_v25 = vmul.f32 %v377_v22, %v50_v24  ;;  %v67_v29 = vmul.f32 %v378_v26, %v61_v23  ;;  %v237_v22 = vshrl.u32 %v236_v14, 7 }
  0x97   :  { %v44_v28 = vpop.permute.xlu0 %43 }
  0x98   :  { %v57_v30 = vadd.f32 %v56_v25, %v44_v28  ;;  %v72_v31 = vpop.permute.xlu1 %71  ;;  %v238_v25 = vsub.s32 0, %v237_v22 }
  0x99   :  { %v78_v32 = vmul.f32 %v379_v27, %v72_v31  ;;  %v248_v27 = vsub.s32 1, %v237_v22 }
  0x9a   :  { %v68_v33 = vadd.f32 %v67_v29, %v57_v30 }
  0x9c   :  { %v79_v35 = vadd.f32 %v78_v32, %v68_v33  ;;  %v83_v36 = vpop.permute.xlu0 %82  ;;  %v258_v32 = vsub.s32 2, %v237_v22 }
  0x9d   :  { %v89_v38 = vmul.f32 %v380_v34, %v83_v36  ;;  %v94_v39 = vpop.permute.xlu1 %93 }
  0x9e   :  { %v100_v41 = vmul.f32 %v381_v37, %v94_v39  ;;  %v268_v39 = vsub.s32 3, %v237_v22 }
  0x9f   :  { %v90_v40 = vadd.f32 %v89_v38, %v79_v35 }
  0xa1   :  { %v116_v45 = vpop.permute.xlu0 %115  ;;  %v101_v46 = vadd.f32 %v100_v41, %v90_v40  ;;  %v278_v40 = vsub.s32 4, %v237_v22 }
  0xa2   :  { %v105_v43 = vpop.permute.xlu1 %104  ;;  %v122_v49 = vmul.f32 %v383_v44, %v116_v45 }
  0xa3   :  { %v111_v47 = vmul.f32 %v382_v42, %v105_v43 }
  0xa5   :  { %v112_v48 = vadd.f32 %v111_v47, %v101_v46 }
  0xa6   :  { %v149_v57 = vpop.permute.xlu0 %148 }
  0xa7   :  { %v127_v51 = vpop.permute.xlu1 %126  ;;  %v123_v52 = vadd.f32 %v122_v49, %v112_v48  ;;  %v155_v61 = vmul.f32 %v386_v56, %v149_v57  ;;  %v288_v48 = vsub.s32 5, %v237_v22 }
  0xa8   :  { %v133_v53 = vmul.f32 %v384_v50, %v127_v51 }
  0xaa   :  { %v134_v58 = vadd.f32 %v133_v53, %v123_v52  ;;  %v308_v52 = vsub.s32 7, %v237_v22 }
  0xab   :  { %v182_v5 = vpop.permute.xlu0 %181 }
  0xac   :  { %v138_v55 = vpop.permute.xlu1 %137  ;;  %v188_v9 = vmul.f32 %v389_v4, %v182_v5 }
  0xad   :  { %v144_v59 = vmul.f32 %v385_v54, %v138_v55  ;;  %v298_v55 = vsub.s32 6, %v237_v22 }
  0xaf   :  { %v145_v60 = vadd.f32 %v144_v59, %v134_v58 }
  0xb0   :  { %v215_v17 = vpop.permute.xlu0 %214 }
  0xb1   :  { %v160_v63 = vpop.permute.xlu1 %159  ;;  %v156_v0 = vadd.f32 %v155_v61, %v145_v60  ;;  %v221_v20 = vmul.f32 %v392_v15, %v215_v17 }
  0xb2   :  { %v166_v1 = vmul.f32 %v387_v62, %v160_v63 }
  0xb4   :  { %v167_v6 = vadd.f32 %v166_v1, %v156_v0 }
  0xb5   :  { %v244_v34 = vpop.permute.xlu0 %243 }
  0xb6   :  { %v171_v3 = vpop.permute.xlu1 %170 }
  0xb7   :  { %v177_v7 = vmul.f32 %v388_v2, %v171_v3 }
  0xb9   :  { %v178_v8 = vadd.f32 %v177_v7, %v167_v6 }
  0xba   :  { %v274_v50 = vpop.permute.xlu0 %273 }
  0xbb   :  { %v193_v11 = vpop.permute.xlu1 %192  ;;  %v189_v12 = vadd.f32 %v188_v9, %v178_v8 }
  0xbc   :  { %v199_v13 = vmul.f32 %v390_v10, %v193_v11 }
  0xbe   :  { %v200_v19 = vadd.f32 %v199_v13, %v189_v12 }
  0xbf   :  { %v304_v60 = vpop.permute.xlu0 %303 }
  0xc0   :  { %v204_v18 = vpop.permute.xlu1 %203 }
  0xc1   :  { %v210_v21 = vmul.f32 %v391_v16, %v204_v18 }
  0xc3   :  { %v211_v23 = vadd.f32 %v210_v21, %v200_v19 }
  0xc4   :  { %v333_v9 = vpop.permute.xlu0 %332 }
  0xc5   :  { %v222_v24 = vadd.f32 %v221_v20, %v211_v23  ;;  %v234_v26 = vpop.permute.xlu1 %233 }
  0xc7   :  { %v223_v28 = vmax.f32 %v222_v24, 0.0 }
  0xc9   :  { %v239_v29 = vrot.slane %v223_v28, %v238_v25  ;;  %v229_v30 = vpop.permute.xlu1 %228  ;;  %v249_v31 = vrot.slane %v223_v28, %v248_v27  ;;  %v259_v38 = vrot.slane %v223_v28, %v258_v32  ;;  %v269_v43 = vrot.slane %v223_v28, %v268_v39 }
  0xca   :  { %v279_v45 = vrot.slane %v223_v28, %v278_v40  ;;  %v289_v54 = vrot.slane %v223_v28, %v288_v48  ;;  %v309_v58 = vrot.slane %v223_v28, %v308_v52  ;;  %v299_v59 = vrot.slane %v223_v28, %v298_v55 }
  0xcb   :  { %v240_v33 = vmul.f32 %v239_v29, %v234_v26  ;;  %v250_v36 = vmul.f32 %v249_v31, %v244_v34 }
  0xcc   :  { %v280_v51 = vmul.f32 %v279_v45, %v274_v50  ;;  %v310_v0 = vmul.f32 %v309_v58, %v304_v60 }
  0xcd   :  { %v241_v35 = vadd.f32 %v240_v33, %v229_v30 }
  0xce   :  { %v254_v37 = vpop.permute.xlu1 %253 }
  0xcf   :  { %v251_v41 = vadd.f32 %v250_v36, %v241_v35  ;;  %v260_v42 = vmul.f32 %v259_v38, %v254_v37 }
  0xd1   :  { %v261_v46 = vadd.f32 %v260_v42, %v251_v41 }
  0xd3   :  { %v264_v44 = vpop.permute.xlu1 %263 }
  0xd4   :  { %v270_v47 = vmul.f32 %v269_v43, %v264_v44 }
  0xd6   :  { %v271_v49 = vadd.f32 %v270_v47, %v261_v46 }
  0xd8   :  { %v284_v53 = vpop.permute.xlu1 %283  ;;  %v281_v56 = vadd.f32 %v280_v51, %v271_v49 }
  0xd9   :  { %v290_v57 = vmul.f32 %v289_v54, %v284_v53 }
  0xdb   :  { %v291_v62 = vadd.f32 %v290_v57, %v281_v56 }
  0xdd   :  { %v294_v61 = vpop.permute.xlu1 %293 }
  0xde   :  { %v300_v63 = vmul.f32 %v299_v59, %v294_v61 }
  0xe0   :  { %v301_v1 = vadd.f32 %v300_v63, %v291_v62 }
  0xe2   :  { %v311_v2 = vadd.f32 %v310_v0, %v301_v1  ;;  %v323_v3 = vpop.permute.xlu1 %322 }
  0xe4   :  { %v312_v4 = vmax.f32 %v311_v2, 0.0 }
  0xe6   :  { %v328_v5 = vrot.slane %v312_v4, %v238_v25  ;;  %v318_v6 = vpop.permute.xlu1 %317  ;;  %v338_v7 = vrot.slane %v312_v4, %v248_v27  ;;  %v348_v13 = vrot.slane %v312_v4, %v258_v32  ;;  %v358_v16 = vrot.slane %v312_v4, %v268_v39 }
  0xe8   :  { %v329_v8 = vmul.f32 %v328_v5, %v323_v3  ;;  %v339_v11 = vmul.f32 %v338_v7, %v333_v9 }
  0xea   :  { %v330_v10 = vadd.f32 %v329_v8, %v318_v6 }
  0xeb   :  { %v343_v12 = vpop.permute.xlu1 %342 }
  0xec   :  { %v340_v14 = vadd.f32 %v339_v11, %v330_v10  ;;  %v349_v15 = vmul.f32 %v348_v13, %v343_v12 }
  0xee   :  { %v350_v18 = vadd.f32 %v349_v15, %v340_v14 }
  0xf0   :  { %v353_v17 = vpop.permute.xlu1 %352 }
  0xf1   :  { %v359_v19 = vmul.f32 %v358_v16, %v353_v17 }
  0xf3   :  { %v360_v20 = vadd.f32 %v359_v19, %v350_v18 }
  0xf5   :  { %361 = vst [vmem:[#allocation5] sm:$0xf] %v360_v20 }
  0xf6   :  { %473 = shalt.err (!%p470_p12)
}
  0xf7   :  { %s474_s24 = scalar_lea.hbm %s650_s7, 64 }
  0xf8   :  { %p475_p13 = scmp.ne.s32.totalorder %s650_s7, %s474_s24  ;;  %p478_p0 = scmp.lt.u32.totalorder %s474_s24, %s650_s7 }
  0xfa   :  { %p480_p1 = pnand %p478_p0, %p475_p13 }
  0xfc   :  { %483 = shalt.err (!%p480_p1)
}
  0xfd   :  { %371 = dma.vmem_to_hbm [thread:$0]  %s369_s21, 64, %s650_s7, [#allocation4]  }
  0xfe   :  { %486 = dma.done.wait [#allocation4], 64  }
  0xff   :  { %487 = vsyncadd [#allocation4], 4294967232 }
 0x100   :  { %375 = vsyncpa [#allocation3], 1 }
 0x101   :  { %376 = vsyncpa [#allocation4], 1 }

</bundles_post_ra>
